<compile_context>
chip_gen: v7x
topology: tpu7x:2x2x1
jax: 0.10.0
libtpu: 0.0.40
codegen_flags: <defaults>
</compile_context>

<pallas_src>
import jax
import jax.numpy as jnp
from jax.experimental import pallas as pl
from jax.experimental.pallas import tpu as pltpu


# TODO(synk): Encoder.forward raises NotImplementedError (abstract interface);
# identity pass-through of X is the only well-defined semantics to implement.
def _identity_copy_kernel(x_ref, o_ref):
    # One unmasked lane-dense load + store per grid step (VMEM tile copy).
    o_ref[...] = x_ref[...]


_LANES = 1024      # last-dim width: large multiple of 128 -> unmasked vst
_ROW_TILE = 256    # 256x1024 f32 tile = 1 MiB; 2 bufs x (in+out) = 4 MiB VMEM


def _round_up(a, b):
    return ((a + b - 1) // b) * b


@jax.jit
def encoder_forward(x, *args):
    """Pass-through encoder 'forward' implemented as a Pallas TPU copy kernel.

    Args:
      x: jnp.ndarray of shape [N, C, H, W] (any dtype).
      *args: ignored (mirrors the PyTorch `forward(self, X, *args)` signature).

    Returns:
      jnp.ndarray identical to x (same shape/dtype).
    """
    del args
    n = x.size
    if n == 0:
        return x
    itemsize = jnp.dtype(x.dtype).itemsize

    # Flatten to a lane-dense 2D slab padded to an (8,128)-aligned tiling.
    rows = pl.cdiv(n, _LANES)
    rows = _round_up(rows, 8)                    # sublane alignment
    tile_rows = min(_ROW_TILE, rows)             # small inputs: one block
    rows = _round_up(rows, tile_rows)
    total = rows * _LANES

    flat = jnp.ravel(x)
    if total != n:
        flat = jnp.pad(flat, (0, total - n))
    slab = flat.reshape(rows, _LANES)

    copied = pl.pallas_call(
        _identity_copy_kernel,
        out_shape=jax.ShapeDtypeStruct((rows, _LANES), x.dtype),
        grid=(rows // tile_rows,),
        in_specs=[pl.BlockSpec((tile_rows, _LANES), lambda i: (i, 0))],
        out_specs=pl.BlockSpec((tile_rows, _LANES), lambda i: (i, 0)),
        compiler_params=pltpu.CompilerParams(
            dimension_semantics=("parallel",)),
        cost_estimate=pl.CostEstimate(
            flops=0, transcendentals=0, bytes_accessed=2 * total * itemsize),
    )(slab)

    return copied.reshape(-1)[:n].reshape(x.shape)


if __name__ == "__main__":
    key = jax.random.PRNGKey(0)
    # Small NCHW input consistent with the encoder-decoder interface.
    x = jax.random.normal(key, (2, 4, 16, 16), dtype=jnp.float32)

    out = encoder_forward(x)
    out = jax.block_until_ready(out)

    # Semantics check: the base Encoder defines no transformation; the kernel
    # must return X unchanged.
    assert out.shape == x.shape and out.dtype == x.dtype
    assert bool(jnp.all(out == x))

    print("KERNEL_OK")
</pallas_src>

<mosaic_0001>
module attributes {stable_mosaic.version = 11 : i64} {
  func.func @_identity_copy_kernel(%arg0: i32, %arg1: memref<8x1024xf32, #tpu.memory_space<vmem>>, %arg2: memref<8x1024xf32, #tpu.memory_space<vmem>>) attributes {dimension_semantics = [#tpu.dimension_semantics<parallel>], iteration_bounds = array<i64: 1>, scalar_prefetch = 0 : i64, scratch_operands = 0 : i64, tpu.core_type = #tpu.core_type<tc>, window_params = [{transform_indices = @transform_0, window_bounds = array<i64: 8, 1024>}, {transform_indices = @transform_1, window_bounds = array<i64: 8, 1024>}]} {
    %c0 = arith.constant 0 : index
    %c0_0 = arith.constant 0 : index
    %0 = vector.load %arg1[%c0, %c0_0] : memref<8x1024xf32, #tpu.memory_space<vmem>>, vector<8x1024xf32>
    %c0_1 = arith.constant 0 : index
    %c0_2 = arith.constant 0 : index
    %1 = vector.load %arg2[%c0_1, %c0_2] : memref<8x1024xf32, #tpu.memory_space<vmem>>, vector<8x1024xf32>
    tpu.vector_store %arg2[%c0_1, %c0_2], %0 {strides = array<i32>} : memref<8x1024xf32, #tpu.memory_space<vmem>>, vector<8x1024xf32>,
    return
  }
  func.func @transform_0(%arg0: i32) -> (i32, i32) {
    %c0_i32 = arith.constant 0 : i32
    %c0_i32_0 = arith.constant 0 : i32
    return %arg0, %c0_i32 : i32, i32
  }
  func.func @transform_1(%arg0: i32) -> (i32, i32) {
    %c0_i32 = arith.constant 0 : i32
    %c0_i32_0 = arith.constant 0 : i32
    return %arg0, %c0_i32 : i32, i32
  }
}

</mosaic_0001>

<bundles_post_ra>
// kernel: encoder_forward.1
= control target key start
LH: loop header
LB: loop body
LE: loop exit
PB: predicated region body
PF: predicated region fallthrough
CT: control target
= control target key end

     0   :  { %s86_s0 = inlined_call_operand.vmem [shape: f32[8,1024], index: 0, kind: input, shape index: {}]   ;;  %s87_s1 = inlined_call_operand.vmem [shape: f32[8,1024], index: 1, kind: output, shape index: {}]  }
   0x1   :  { %v8_v0 = vld [vmem:[%s86_s0] sm:$0xff]  ;;  %v9_v1 = vld [vmem:[%s86_s0 + $0x8] sm:$0xff]  ;;  %v10_v2 = vld [vmem:[%s86_s0 + $0x10] sm:$0xff] }
   0x2   :  { %16 = vst [vmem:[%s87_s1] sm:$0xff] %v8_v0  ;;  %17 = vst [vmem:[%s87_s1 + $0x8] sm:$0xff] %v9_v1  ;;  %v11_v3 = vld [vmem:[%s86_s0 + $0x18] sm:$0xff]  ;;  %v12_v4 = vld [vmem:[%s86_s0 + $0x20] sm:$0xff] }
   0x3   :  { %18 = vst [vmem:[%s87_s1 + $0x10] sm:$0xff] %v10_v2  ;;  %v13_v5 = vld [vmem:[%s86_s0 + $0x28] sm:$0xff]  ;;  %19 = vst [vmem:[%s87_s1 + $0x18] sm:$0xff] %v11_v3  ;;  %v14_v6 = vld [vmem:[%s86_s0 + $0x30] sm:$0xff] }
   0x4   :  { %20 = vst [vmem:[%s87_s1 + $0x20] sm:$0xff] %v12_v4  ;;  %21 = vst [vmem:[%s87_s1 + $0x28] sm:$0xff] %v13_v5  ;;  %v15_v7 = vld [vmem:[%s86_s0 + $0x38] sm:$0xff] }
   0x5   :  { %22 = vst [vmem:[%s87_s1 + $0x30] sm:$0xff] %v14_v6  ;;  %23 = vst [vmem:[%s87_s1 + $0x38] sm:$0xff] %v15_v7 }

</bundles_post_ra>
